<compile_context>
chip_gen: v5e
topology: v5e:2x2
jax: 0.10.0
libtpu: 0.0.40
codegen_flags: <defaults>
</compile_context>

<pallas_src>
import jax
import jax.numpy as jnp
from jax.experimental import pallas as pl
from jax.experimental.pallas import tpu as pltpu


def _aggregator_kernel(emb_ref, w1_ref, b1_ref, w2_ref, b2_ref, sl_ref, out_ref):
    # Block shapes (leading net dim is size 1, indexed away with [0]):
    #   emb_ref: [1, S, B, Dmax]   w1_ref: [1, S, Dmax, Dmax]
    #   b1_ref:  [1, 1, Dmax]      w2_ref: [1, Dmax, S]   b2_ref: [1, 1, S]
    #   sl_ref:  [1, B, S*C]       out_ref: [1, B, C]
    S = emb_ref.shape[1]
    C = out_ref.shape[-1]

    # proj_head first Linear: sum of per-stage matmuls == concat(emb) @ W1
    acc = jnp.dot(emb_ref[0, 0], w1_ref[0, 0], preferred_element_type=jnp.float32)
    for j in range(1, S):
        acc = acc + jnp.dot(emb_ref[0, j], w1_ref[0, j],
                            preferred_element_type=jnp.float32)
    h = jnp.maximum(acc + b1_ref[0], 0.0)

    # second Linear -> per-stage mixing logits [B, S]
    logit = jnp.dot(h, w2_ref[0], preferred_element_type=jnp.float32) + b2_ref[0]

    # softmax over the stage axis (dim=1); reciprocal goes to the EUP slot
    m = jnp.max(logit, axis=1, keepdims=True)
    e = jnp.exp(logit - m)
    inv = pl.reciprocal(jnp.sum(e, axis=1, keepdims=True), approx=False)
    weights = e * inv                                          # [B, S]

    # weighted sum of per-stage logits: lane-dense unrolled FMA on [B, S*C]
    sl = sl_ref[0]
    out = weights[:, 0:1] * sl[:, 0:C]
    for j in range(1, S):
        out = out + weights[:, j:j + 1] * sl[:, j * C:(j + 1) * C]
    out_ref[0] = out.astype(out_ref.dtype)


def _fused_aggregate(emb, w1, b1, w2, b2, sl, num_classes):
    N, S, B, Dmax = emb.shape
    C = num_classes

    in_bytes = sum(int(x.size) * x.dtype.itemsize for x in (emb, w1, b1, w2, b2, sl))
    cost = pl.CostEstimate(
        flops=2 * N * B * (S * Dmax * Dmax + Dmax * S) + 2 * N * B * S * C,
        transcendentals=N * B * S,
        bytes_accessed=in_bytes + N * B * C * 4,
    )

    return pl.pallas_call(
        _aggregator_kernel,
        out_shape=jax.ShapeDtypeStruct((N, B, C), jnp.float32),
        grid=(N,),
        in_specs=[
            pl.BlockSpec((1, S, B, Dmax), lambda i: (i, 0, 0, 0)),
            pl.BlockSpec((1, S, Dmax, Dmax), lambda i: (i, 0, 0, 0)),
            pl.BlockSpec((1, 1, Dmax), lambda i: (i, 0, 0)),
            pl.BlockSpec((1, Dmax, S), lambda i: (i, 0, 0)),
            pl.BlockSpec((1, 1, S), lambda i: (i, 0, 0)),
            pl.BlockSpec((1, B, S * C), lambda i: (i, 0, 0)),
        ],
        out_specs=pl.BlockSpec((1, B, C), lambda i: (i, 0, 0)),
        compiler_params=pltpu.CompilerParams(dimension_semantics=("parallel",)),
        cost_estimate=cost,
    )(emb, w1, b1, w2, b2, sl)


def pack_params(params, number_stage, dim_in):
    """params: list[net] of (w1 [S*D_i, D_i], b1 [1, D_i], w2 [D_i, S], b2 [1, S])
    (weights already pre-transposed to [in, out] vs. PyTorch's [out, in]).
    Returns zero-padded, net-stacked slabs (done once at init)."""
    S = number_stage
    Dmax = max(dim_in)
    w1s, b1s, w2s, b2s = [], [], [], []
    for (w1, b1, w2, b2), d in zip(params, dim_in):
        blocks = [jnp.pad(w1[j * d:(j + 1) * d, :], ((0, Dmax - d), (0, Dmax - d)))
                  for j in range(S)]
        w1s.append(jnp.stack(blocks, axis=0))                  # [S, Dmax, Dmax]
        b1s.append(jnp.pad(b1, ((0, 0), (0, Dmax - d))))       # [1, Dmax]
        w2s.append(jnp.pad(w2, ((0, Dmax - d), (0, 0))))       # [Dmax, S]
        b2s.append(b2)                                         # [1, S]
    return (jnp.stack(w1s), jnp.stack(b1s), jnp.stack(w2s), jnp.stack(b2s))


def aggregator_forward(embeddings, logits, packed_params, dim_in):
    """embeddings: list[net] of list[stage] of [B, D_i]
       logits:     list[net] of list[stage] of [B, C]"""
    w1, b1, w2, b2 = packed_params
    N, S, Dmax, _ = w1.shape
    C = logits[0][0].shape[1]

    # pack activations: zero-pad per-stage embeddings to Dmax -> [N, S, B, Dmax]
    emb = jnp.stack([
        jnp.stack([jnp.pad(embeddings[i][j], ((0, 0), (0, Dmax - dim_in[i])))
                   for j in range(S)], axis=0)
        for i in range(N)], axis=0)
    # lane-concatenate stage logits -> [N, B, S*C]
    sl = jnp.stack([jnp.concatenate(logits[i], axis=1) for i in range(N)], axis=0)

    out = _fused_aggregate(emb, w1, b1, w2, b2, sl, C)         # [N, B, C]
    return [out[i] for i in range(N)]


def _reference_forward(embeddings, logits, params):
    out = []
    for i, (w1, b1, w2, b2) in enumerate(params):
        feat = jnp.concatenate(embeddings[i], axis=1)
        h = jnp.maximum(feat @ w1 + b1, 0.0)
        logit = h @ w2 + b2
        weights = jax.nn.softmax(logit, axis=1)
        acc = 0.0
        for j in range(len(logits[i])):
            acc = acc + logits[i][j] * weights[:, j][:, None]
        out.append(acc)
    return out


if __name__ == "__main__":
    # Small synthetic configuration
    number_net = 2
    number_stage = 3
    dim_in = [32, 48]
    batch = 2
    num_classes = 16

    key = jax.random.PRNGKey(0)

    # deterministic parameter init (synthetic, not a checkpoint load)
    params = []
    for i in range(number_net):
        d = dim_in[i]
        key, k1, k2, k3, k4 = jax.random.split(key, 5)
        w1 = jax.random.normal(k1, (number_stage * d, d), jnp.float32) * 0.05
        b1 = jax.random.normal(k2, (1, d), jnp.float32) * 0.05
        w2 = jax.random.normal(k3, (d, number_stage), jnp.float32) * 0.05
        b2 = jax.random.normal(k4, (1, number_stage), jnp.float32) * 0.05
        params.append((w1, b1, w2, b2))

    packed = pack_params(params, number_stage, dim_in)

    # deterministic inputs
    embeddings = []
    logits = []
    for i in range(number_net):
        embs_i, logs_i = [], []
        for j in range(number_stage):
            key, ke, kl = jax.random.split(key, 3)
            embs_i.append(jax.random.normal(ke, (batch, dim_in[i]), jnp.float32))
            logs_i.append(jax.random.normal(kl, (batch, num_classes), jnp.float32))
        embeddings.append(embs_i)
        logits.append(logs_i)

    out = aggregator_forward(embeddings, logits, packed, dim_in)
    out = [jax.block_until_ready(o) for o in out]

    ref = _reference_forward(embeddings, logits, params)
    for o, r in zip(out, ref):
        assert o.shape == (batch, num_classes)
        assert jnp.allclose(o, r, atol=1e-4, rtol=1e-4), "mismatch vs reference"

    print("KERNEL_OK")
</pallas_src>

<mosaic_0001>
module attributes {stable_mosaic.version = 11 : i64} {
  func.func @_aggregator_kernel(%arg0: i32, %arg1: memref<1x3x2x48xf32, #tpu.memory_space<vmem>>, %arg2: memref<1x3x48x48xf32, #tpu.memory_space<vmem>>, %arg3: memref<1x1x48xf32, #tpu.memory_space<vmem>>, %arg4: memref<1x48x3xf32, #tpu.memory_space<vmem>>, %arg5: memref<1x1x3xf32, #tpu.memory_space<vmem>>, %arg6: memref<1x2x48xf32, #tpu.memory_space<vmem>>, %arg7: memref<1x2x16xf32, #tpu.memory_space<vmem>>) attributes {dimension_semantics = [#tpu.dimension_semantics<parallel>], iteration_bounds = array<i64: 2>, scalar_prefetch = 0 : i64, scratch_operands = 0 : i64, tpu.core_type = #tpu.core_type<tc>, window_params = [{transform_indices = @transform_0, window_bounds = array<i64: 1, 3, 2, 48>}, {transform_indices = @transform_1, window_bounds = array<i64: 1, 3, 48, 48>}, {transform_indices = @transform_2, window_bounds = array<i64: 1, 1, 48>}, {transform_indices = @transform_3, window_bounds = array<i64: 1, 48, 3>}, {transform_indices = @transform_4, window_bounds = array<i64: 1, 1, 3>}, {transform_indices = @transform_5, window_bounds = array<i64: 1, 2, 48>}, {transform_indices = @transform_6, window_bounds = array<i64: 1, 2, 16>}]} {
    %c0 = arith.constant 0 : index
    %c0_0 = arith.constant 0 : index
    %c0_1 = arith.constant 0 : index
    %c0_2 = arith.constant 0 : index
    %0 = vector.load %arg1[%c0, %c0_0, %c0_1, %c0_2] : memref<1x3x2x48xf32, #tpu.memory_space<vmem>>, vector<1x1x2x48xf32>
    %1 = vector.shape_cast %0 : vector<1x1x2x48xf32> to vector<2x48xf32>
    %c0_3 = arith.constant 0 : index
    %c0_4 = arith.constant 0 : index
    %c0_5 = arith.constant 0 : index
    %c0_6 = arith.constant 0 : index
    %2 = vector.load %arg2[%c0_3, %c0_4, %c0_5, %c0_6] : memref<1x3x48x48xf32, #tpu.memory_space<vmem>>, vector<1x1x48x48xf32>
    %3 = vector.shape_cast %2 : vector<1x1x48x48xf32> to vector<48x48xf32>
    %cst = arith.constant dense<0.000000e+00> : vector<2x48xf32>
    %4 = tpu.matmul %1, %3, %cst {dimension_numbers = #tpu.dot_dimension_numbers<[1], [0], [0], [1], [0, 0, 1, 1], [], []>} : vector<2x48xf32>, vector<48x48xf32>, vector<2x48xf32> -> vector<2x48xf32>
    %c0_7 = arith.constant 0 : index
    %c1 = arith.constant 1 : index
    %c0_8 = arith.constant 0 : index
    %c0_9 = arith.constant 0 : index
    %5 = vector.load %arg1[%c0_7, %c1, %c0_8, %c0_9] : memref<1x3x2x48xf32, #tpu.memory_space<vmem>>, vector<1x1x2x48xf32>
    %6 = vector.shape_cast %5 : vector<1x1x2x48xf32> to vector<2x48xf32>
    %c0_10 = arith.constant 0 : index
    %c1_11 = arith.constant 1 : index
    %c0_12 = arith.constant 0 : index
    %c0_13 = arith.constant 0 : index
    %7 = vector.load %arg2[%c0_10, %c1_11, %c0_12, %c0_13] : memref<1x3x48x48xf32, #tpu.memory_space<vmem>>, vector<1x1x48x48xf32>
    %8 = vector.shape_cast %7 : vector<1x1x48x48xf32> to vector<48x48xf32>
    %cst_14 = arith.constant dense<0.000000e+00> : vector<2x48xf32>
    %9 = tpu.matmul %6, %8, %cst_14 {dimension_numbers = #tpu.dot_dimension_numbers<[1], [0], [0], [1], [0, 0, 1, 1], [], []>} : vector<2x48xf32>, vector<48x48xf32>, vector<2x48xf32> -> vector<2x48xf32>
    %10 = arith.addf %4, %9 : vector<2x48xf32>
    %c0_15 = arith.constant 0 : index
    %c2 = arith.constant 2 : index
    %c0_16 = arith.constant 0 : index
    %c0_17 = arith.constant 0 : index
    %11 = vector.load %arg1[%c0_15, %c2, %c0_16, %c0_17] : memref<1x3x2x48xf32, #tpu.memory_space<vmem>>, vector<1x1x2x48xf32>
    %12 = vector.shape_cast %11 : vector<1x1x2x48xf32> to vector<2x48xf32>
    %c0_18 = arith.constant 0 : index
    %c2_19 = arith.constant 2 : index
    %c0_20 = arith.constant 0 : index
    %c0_21 = arith.constant 0 : index
    %13 = vector.load %arg2[%c0_18, %c2_19, %c0_20, %c0_21] : memref<1x3x48x48xf32, #tpu.memory_space<vmem>>, vector<1x1x48x48xf32>
    %14 = vector.shape_cast %13 : vector<1x1x48x48xf32> to vector<48x48xf32>
    %cst_22 = arith.constant dense<0.000000e+00> : vector<2x48xf32>
    %15 = tpu.matmul %12, %14, %cst_22 {dimension_numbers = #tpu.dot_dimension_numbers<[1], [0], [0], [1], [0, 0, 1, 1], [], []>} : vector<2x48xf32>, vector<48x48xf32>, vector<2x48xf32> -> vector<2x48xf32>
    %16 = arith.addf %10, %15 : vector<2x48xf32>
    %c0_23 = arith.constant 0 : index
    %c0_24 = arith.constant 0 : index
    %c0_25 = arith.constant 0 : index
    %17 = vector.load %arg3[%c0_23, %c0_24, %c0_25] : memref<1x1x48xf32, #tpu.memory_space<vmem>>, vector<1x1x48xf32>
    %18 = vector.shape_cast %17 : vector<1x1x48xf32> to vector<1x48xf32>
    %19 = vector.broadcast %18 : vector<1x48xf32> to vector<2x48xf32>
    %20 = arith.addf %16, %19 : vector<2x48xf32>
    %cst_26 = arith.constant 0.000000e+00 : f32
    %21 = vector.broadcast %cst_26 : f32 to vector<2x48xf32>
    %22 = arith.maximumf %20, %21 : vector<2x48xf32>
    %c0_27 = arith.constant 0 : index
    %c0_28 = arith.constant 0 : index
    %c0_29 = arith.constant 0 : index
    %23 = vector.load %arg4[%c0_27, %c0_28, %c0_29] : memref<1x48x3xf32, #tpu.memory_space<vmem>>, vector<1x48x3xf32>
    %24 = vector.shape_cast %23 : vector<1x48x3xf32> to vector<48x3xf32>
    %cst_30 = arith.constant dense<0.000000e+00> : vector<2x3xf32>
    %25 = tpu.matmul %22, %24, %cst_30 {dimension_numbers = #tpu.dot_dimension_numbers<[1], [0], [0], [1], [0, 0, 1, 1], [], []>} : vector<2x48xf32>, vector<48x3xf32>, vector<2x3xf32> -> vector<2x3xf32>
    %c0_31 = arith.constant 0 : index
    %c0_32 = arith.constant 0 : index
    %c0_33 = arith.constant 0 : index
    %26 = vector.load %arg5[%c0_31, %c0_32, %c0_33] : memref<1x1x3xf32, #tpu.memory_space<vmem>>, vector<1x1x3xf32>
    %27 = vector.shape_cast %26 : vector<1x1x3xf32> to vector<1x3xf32>
    %28 = vector.broadcast %27 : vector<1x3xf32> to vector<2x3xf32>
    %29 = arith.addf %25, %28 : vector<2x3xf32>
    %cst_34 = arith.constant dense<0xFF800000> : vector<2xf32>
    %30 = vector.multi_reduction <maximumf>, %29, %cst_34 [1] : vector<2x3xf32> to vector<2xf32>
    %31 = vector.shape_cast %30 : vector<2xf32> to vector<2x1xf32>
    %32 = vector.broadcast %31 : vector<2x1xf32> to vector<2x3xf32>
    %33 = arith.subf %29, %32 : vector<2x3xf32>
    %34 = math.exp %33 : vector<2x3xf32>
    %cst_35 = arith.constant dense<0.000000e+00> : vector<2xf32>
    %35 = vector.multi_reduction <add>, %34, %cst_35 [1] : vector<2x3xf32> to vector<2xf32>
    %36 = vector.shape_cast %35 : vector<2xf32> to vector<2x1xf32>
    %37 = tpu.reciprocal %36 : vector<2x1xf32> -> vector<2x1xf32>
    %38 = vector.broadcast %37 : vector<2x1xf32> to vector<2x3xf32>
    %39 = arith.mulf %34, %38 : vector<2x3xf32>
    %c0_36 = arith.constant 0 : index
    %c0_37 = arith.constant 0 : index
    %c0_38 = arith.constant 0 : index
    %40 = vector.load %arg6[%c0_36, %c0_37, %c0_38] : memref<1x2x48xf32, #tpu.memory_space<vmem>>, vector<1x2x48xf32>
    %41 = vector.shape_cast %40 : vector<1x2x48xf32> to vector<2x48xf32>
    %42 = vector.extract_strided_slice %39 {offsets = [0, 0], sizes = [2, 1], strides = [1, 1]} : vector<2x3xf32> to vector<2x1xf32>
    %43 = vector.extract_strided_slice %41 {offsets = [0, 0], sizes = [2, 16], strides = [1, 1]} : vector<2x48xf32> to vector<2x16xf32>
    %44 = vector.broadcast %42 : vector<2x1xf32> to vector<2x16xf32>
    %45 = arith.mulf %44, %43 : vector<2x16xf32>
    %46 = vector.extract_strided_slice %39 {offsets = [0, 1], sizes = [2, 1], strides = [1, 1]} : vector<2x3xf32> to vector<2x1xf32>
    %47 = vector.extract_strided_slice %41 {offsets = [0, 16], sizes = [2, 16], strides = [1, 1]} : vector<2x48xf32> to vector<2x16xf32>
    %48 = vector.broadcast %46 : vector<2x1xf32> to vector<2x16xf32>
    %49 = arith.mulf %48, %47 : vector<2x16xf32>
    %50 = arith.addf %45, %49 : vector<2x16xf32>
    %51 = vector.extract_strided_slice %39 {offsets = [0, 2], sizes = [2, 1], strides = [1, 1]} : vector<2x3xf32> to vector<2x1xf32>
    %52 = vector.extract_strided_slice %41 {offsets = [0, 32], sizes = [2, 16], strides = [1, 1]} : vector<2x48xf32> to vector<2x16xf32>
    %53 = vector.broadcast %51 : vector<2x1xf32> to vector<2x16xf32>
    %54 = arith.mulf %53, %52 : vector<2x16xf32>
    %55 = arith.addf %50, %54 : vector<2x16xf32>
    %c0_39 = arith.constant 0 : index
    %c0_40 = arith.constant 0 : index
    %c0_41 = arith.constant 0 : index
    %56 = vector.load %arg7[%c0_39, %c0_40, %c0_41] : memref<1x2x16xf32, #tpu.memory_space<vmem>>, vector<1x2x16xf32>
    %57 = vector.shape_cast %56 : vector<1x2x16xf32> to vector<2x16xf32>
    %58 = vector.shape_cast %55 : vector<2x16xf32> to vector<1x2x16xf32>
    tpu.vector_store %arg7[%c0_39, %c0_40, %c0_41], %58 {strides = array<i32>} : memref<1x2x16xf32, #tpu.memory_space<vmem>>, vector<1x2x16xf32>,
    return
  }
  func.func @transform_0(%arg0: i32) -> (i32, i32, i32, i32) {
    %c0_i32 = arith.constant 0 : i32
    %c0_i32_0 = arith.constant 0 : i32
    %c0_i32_1 = arith.constant 0 : i32
    %c0_i32_2 = arith.constant 0 : i32
    return %arg0, %c0_i32, %c0_i32_0, %c0_i32_1 : i32, i32, i32, i32
  }
  func.func @transform_1(%arg0: i32) -> (i32, i32, i32, i32) {
    %c0_i32 = arith.constant 0 : i32
    %c0_i32_0 = arith.constant 0 : i32
    %c0_i32_1 = arith.constant 0 : i32
    %c0_i32_2 = arith.constant 0 : i32
    return %arg0, %c0_i32, %c0_i32_0, %c0_i32_1 : i32, i32, i32, i32
  }
  func.func @transform_2(%arg0: i32) -> (i32, i32, i32) {
    %c0_i32 = arith.constant 0 : i32
    %c0_i32_0 = arith.constant 0 : i32
    %c0_i32_1 = arith.constant 0 : i32
    return %arg0, %c0_i32, %c0_i32_0 : i32, i32, i32
  }
  func.func @transform_3(%arg0: i32) -> (i32, i32, i32) {
    %c0_i32 = arith.constant 0 : i32
    %c0_i32_0 = arith.constant 0 : i32
    %c0_i32_1 = arith.constant 0 : i32
    return %arg0, %c0_i32, %c0_i32_0 : i32, i32, i32
  }
  func.func @transform_4(%arg0: i32) -> (i32, i32, i32) {
    %c0_i32 = arith.constant 0 : i32
    %c0_i32_0 = arith.constant 0 : i32
    %c0_i32_1 = arith.constant 0 : i32
    return %arg0, %c0_i32, %c0_i32_0 : i32, i32, i32
  }
  func.func @transform_5(%arg0: i32) -> (i32, i32, i32) {
    %c0_i32 = arith.constant 0 : i32
    %c0_i32_0 = arith.constant 0 : i32
    %c0_i32_1 = arith.constant 0 : i32
    return %arg0, %c0_i32, %c0_i32_0 : i32, i32, i32
  }
  func.func @transform_6(%arg0: i32) -> (i32, i32, i32) {
    %c0_i32 = arith.constant 0 : i32
    %c0_i32_0 = arith.constant 0 : i32
    %c0_i32_1 = arith.constant 0 : i32
    return %arg0, %c0_i32, %c0_i32_0 : i32, i32, i32
  }
}

</mosaic_0001>

<bundles_post_ra>
// kernel: tpu_custom_call.1
= control target key start
LH: loop header
LB: loop body
LE: loop exit
PB: predicated region body
PF: predicated region fallthrough
CT: control target
= control target key end

     0   :  { %11 = vsyncpa [#allocation3], 0  ;;  %s1099_s0 = inlined_call_operand.vmem [shape: f32[2,3,2,48], index: 0, kind: input, shape index: {}]   ;;  %s1100_s1 = inlined_call_operand.hbm [shape: f32[2,3,48,48], index: 1, kind: input, shape index: {}]   ;;  %s1101_s2 = inlined_call_operand.vmem [shape: f32[2,1,48], index: 2, kind: input, shape index: {}]   ;;  %s1102_s3 = inlined_call_operand.vmem [shape: f32[2,48,3], index: 3, kind: input, shape index: {}]   ;;  %s1103_s4 = inlined_call_operand.vmem [shape: f32[2,1,3], index: 4, kind: input, shape index: {}]   ;;  %s1104_s5 = inlined_call_operand.vmem [shape: f32[2,2,48], index: 5, kind: input, shape index: {}]   ;;  %s1105_s6 = inlined_call_operand.hbm [shape: f32[2,2,16], index: 6, kind: output, shape index: {}]  }
   0x1   :  { %13 = vsyncpa [#allocation3 + $0x1], 0 }
   0x2   :  { %14 = vsyncpa [#allocation4], 0 }
   0x3   :  { %16 = vsyncpa [#allocation4 + $0x1], 0  ;;  %s925_s21 = smov 0   ;;  %s927_s22 = smov 0  }
   0x4   :  { %s929_s23 = smov 0   ;;  %s931_s24 = smov 0  }
   0x5 LB: > { %s946_s25 = sadd.s32 4294967295, %s881_s24   ;;  %s686_s26 = sadd.s32 4294967294, %s881_s24   ;;  %s881_s24 = sphi %s931_s24, %s1115_s24   ;;  %s877_s23 = sphi %s929_s23, %s1114_s23   ;;  %s873_s22 = sphi %s927_s22, %s1113_s22   ;;  %s869_s21 = sphi %s925_s21, %s1112_s21  }
   0x6   : > { %s950_s27 = sadd.s32 1, %s881_s24   ;;  %s55_s28 = sadd.s32 1, %s877_s23 }
   0x7   : > { %s52_s29 = ssub.s32 %s881_s24, %s950_s27  ;;  %p62_p0 = scmp.ne.s32.totalorder %s877_s23, %s873_s22 }
   0x8   : > { %p53_p1 = scmp.eq.s32.totalorder %s52_s29, 0  ;;  %p63_p2 = scmp.eq.s32.totalorder %s881_s24, 0 }
   0x9   : > { %p68_p3 = scmp.ne.s32.totalorder %s873_s22, %s869_s21  ;;  %p69_p4 = scmp.eq.s32.totalorder %s946_s25, 0 }
   0xa   : > { %s962_s30 = scalar_select %p53_p1, %s877_s23, %s55_s28  }
   0xb   : > { %p64_p5 = por %p63_p2, %p62_p0  ;;  %p964_p6 = por %p69_p4, %p68_p3 }
   0xc   : > { %1106 = sst [smem:[#allocation8_spill]] %s962_s30  ;;  %p196_p7 = scmp.eq.s32.totalorder %s946_s25, 1 }
   0xd   : > { %p202_p8 = scmp.eq.s32.totalorder %s686_s26, 1  ;;  %p688_p9 = scmp.ge.s32.totalorder %s881_s24, 2 }
   0xe   : > { %p734_p10 = scmp.lt.s32.totalorder %s881_s24, 2  ;;  %p971_p11 = por %p196_p7, %p62_p0 }
   0xf   : > { %p975_p12 = por %p202_p8, %p68_p3  ;;  %s230_s10 = sand.u32 1, %s877_s23  }
  0x10   : > { %s718_s11 = smul.u32 144, %s881_s24  ;;  %p984_p13 = pnand %p734_p10, %p64_p5 }
  0x11   : > { %s717_s12 = smul.u32 144, %s230_s10  ;;  %s231_s20 = scalar_lea.sflag [#allocation3], %s230_s10 }
  0x12   : > { %s239_s15 = scalar_lea.hbm %s1100_s1, %s718_s11  ;;  %p789_p1 = pneg %p984_p13 }
  0x13   : > { %s240_s17 = sshll.u32 %s239_s15, 4  ;;  %s234_s18 = scalar_lea.vmem [#allocation2], %s717_s12  ;;  %s241_s17 = int_to_ptr.hbm [resolvable:$true] %s240_s17 }
  0x14   : > { %s242_s19 = sshll.u32 %s234_s18, 4  ;;  %s785_s26 = sshra.s32 %s241_s17, 4  ;;  %s243_s19 = int_to_ptr.vmem [resolvable:$true] %s242_s19  ;;  %s786_s26 = int_to_ptr.hbm [resolvable:$true] %s785_s26 }
  0x15   : > { %s787_s28 = scalar_lea.hbm %s786_s26, 144  ;;  %s792_s13 = scalar_lea.hbm %s1100_s1, 288 }
  0x16   : > { %p788_p0 = scmp.ne.s32.totalorder %s786_s26, %s787_s28  ;;  %p793_p4 = scmp.lt.s32.totalorder %s786_s26, %s1100_s1 }
  0x17   : > { %p794_p5 = scmp.lt.s32.totalorder %s792_s13, %s787_s28 }
  0x18   : > { %p790_p2 = pnand %p789_p1, %p788_p0 }
  0x19   : > { %p795_p7 = por %p794_p5, %p793_p4 }
  0x1a   : > { %p791_p3 = pneg %p790_p2 }
  0x1c   : > { %p796_p8 = pnand %p795_p7, %p791_p3 }
  0x1e   : > { %799 = shalt.err (!%p796_p8)
}
  0x1f   : > { %s883_s10 = smov 128   ;;  %s884_s12 = smov 8  }
  0x20   : > { %729 = dma.hbm_to_vmem [thread:$0]  (!%p984_p13), %s241_s17, 2304, %s243_s19, %s231_s20, %s883_s10, %s883_s10, %s884_s12  }
  0x21   : > { %p690_p10 = scmp.ge.s32.totalorder %s881_s24, 1  ;;  %p277_p0 = scmp.lt.s32.totalorder %s881_s24, 3 }
  0x23   : > { %p278_p1 = pnand %p690_p10, %p277_p0 }
  0x24   : > { %s1001_s15 = sand.u32 (!%p278_p1), 1, %s873_s22  }
  0x25   : > { %281 = sbr.rel (%p278_p1) target bundleno = 837 (0x345), region = 44  ;;  %s284_s18 = scalar_lea.sflag (!%p278_p1), [#allocation3], %s1001_s15 }
  0x26   : > { %s719_s30 = smul.u32 (!%p278_p1), 144, %s1001_s15 }
  0x28   : > { %s1005_s26 = scalar_lea.vmem (!%p278_p1), [#allocation2], %s719_s30 }
  0x2a   : > { %860 = dma.done.wait (%p964_p6), %s284_s18, 2304  }
  0x2b   : > { %862 = vsyncadd (%p964_p6), %s284_s18, 4294964992  ;;  %p337_p13 = scmp.lt.s32.totalorder %s946_s25, 1  ;;  %v710_v0 = vld [vmem:[%s1005_s26 + $0x88] sm:$0xff]  ;;  %v709_v1 = vld [vmem:[%s1005_s26 + $0x80] sm:$0xff]  ;;  %vm373_vm0 = vcmask 392192   ;;  %vm492_vm1 = vcmask 17408  }
  0x2c   : > { %v701_v2 = vld [vmem:[%s1005_s26 + $0x58] sm:$0xff]  ;;  %442 = vmatpush.msra.mxu2 %v710_v0  ;;  %v363_v3 = vld [vmem:[%s1005_s26 + $0x28] sm:$0xff]  ;;  %v700_v4 = vld [vmem:[%s1005_s26 + $0x50] sm:$0xff]  ;;  %v885_v44 = vmov 1   ;;  %v886_v45 = vmov 0   ;;  %v887_v46 = vmov 2  }
  0x2d   : > { %s1013_s16 = scalar_select %p337_p13, %s946_s25, 1  ;;  %387 = vmatpush.msra.mxu0 %v701_v2  ;;  %410 = vmatpush.msra.mxu1 %v363_v3  ;;  %v708_v5 = vld [vmem:[%s1005_s26 + $0x78] sm:$0xff]  ;;  %v362_v6 = vld [vmem:[%s1005_s26 + $0x20] sm:$0xff]  ;;  %v699_v7 = vld [vmem:[%s1005_s26 + $0x48] sm:$0xff]  ;;  %vm544_vm6 = vcmask 123904  }
  0x2e   : > { %443 = vmatpush.msra.mxu2 %v709_v1  ;;  %v361_v8 = vld [vmem:[%s1005_s26 + $0x18] sm:$0xff]  ;;  %v707_v9 = vld [vmem:[%s1005_s26 + $0x70] sm:$0xff]  ;;  %v698_v10 = vld [vmem:[%s1005_s26 + $0x40] sm:$0xff]  ;;  %775 = vset.pattern.permute.xlu1 %v885_v44  ;;  %s889_s29 = smov 96   ;;  %s691_s11 = sshll.u32 %s1001_s15, 1 }
  0x2f   : > { %s721_s7 = smul.u32 48, %s1013_s16  ;;  %388 = vmatpush.msra.mxu0 %v700_v4  ;;  %411 = vmatpush.msra.mxu1 %v362_v6  ;;  %v360_v11 = vld [vmem:[%s1005_s26 + $0x10] sm:$0xff]  ;;  %v706_v12 = vld [vmem:[%s1005_s26 + $0x68] sm:$0xff]  ;;  %v697_v13 = vld [vmem:[%s1005_s26 + $0x38] sm:$0xff]  ;;  %s344_s12 = scalar_lea.vmem %s1101_s2, %s1013_s16 }
  0x30   : > { %s720_s17 = smul.u32 6, %s1013_s16  ;;  %444 = vmatpush.msra.mxu2 %v708_v5  ;;  %v359_v14 = vld [vmem:[%s1005_s26 + $0x8] sm:$0xff]  ;;  %v705_v16 = vld [vmem:[%s1005_s26 + $0x60] sm:$0xff]  ;;  %v696_v17 = vld [vmem:[%s1005_s26 + $0x30] sm:$0xff]  ;;  %777 = vset.pattern.permute.xlu2 %v886_v45 }
  0x31   : > { %s1031_s28 = scalar_lea.vmem %s1102_s3, %s721_s7  ;;  %389 = vmatpush.msra.mxu0 %v699_v7  ;;  %412 = vmatpush.msra.mxu1 %v361_v8  ;;  %v358_v19 = vld [vmem:[%s1005_s26] sm:$0xff]  ;;  %s352_s26 = scalar_lea.vmem %s1103_s4, %s1013_s16 }
  0x32   : > { %s341_s13 = scalar_lea.vmem %s1099_s0, %s720_s17  ;;  %445 = vmatpush.msra.mxu2 %v707_v9  ;;  %v464_v15 = vld [vmem:[%s1031_s28 + $0x28] sm:$0xff]  ;;  %v463_v22 = vld [vmem:[%s1031_s28 + $0x20] sm:$0xff]  ;;  %v462_v23 = vld [vmem:[%s1031_s28 + $0x18] sm:$0xff]  ;;  %778 = vset.pattern.permute.xlu0 %v887_v46  ;;  %s694_s7 = sshll.u32 %s1013_s16, 1 }
  0x33   : > { %390 = vmatpush.msra.mxu0 %v698_v10  ;;  %413 = vmatpush.msra.mxu1 %v360_v11  ;;  %v704_v18 = vld [vmem:[%s341_s13 + $0x4] sm:$0x3]  ;;  %v695_v20 = vld [vmem:[%s341_s13 + $0x2] sm:$0x3]  ;;  %v357_v21 = vld [vmem:[%s341_s13] sm:$0x3]  ;;  %s356_s20 = scalar_lea.vmem %s1104_s5, %s694_s7 }
  0x34   : > { %482 = vmatpush.msra.mxu3 %v464_v15  ;;  %446 = vmatpush.msra.mxu2 %v706_v12  ;;  %v461_v24 = vld [vmem:[%s1031_s28 + $0x10] sm:$0xff]  ;;  %v460_v25 = vld [vmem:[%s1031_s28 + $0x8] sm:$0xff]  ;;  %v459_v26 = vld [vmem:[%s1031_s28] sm:$0xff]  ;;  %s888_s28 = smov 112   ;;  %s714_s13 = sshll.u32 %s946_s25, 1 }
  0x35   : > { %391 = vmatpush.msra.mxu0 %v697_v13  ;;  %414 = vmatpush.msra.mxu1 %v359_v14  ;;  %v779_v30 = vld [vmem:[%s344_s12] ss:$0 sm:$0xff]  ;;  %s557_s16 = scalar_lea.hbm %s1105_s6, %s714_s13  ;;  %s336_s12 = scalar_lea.vmem [#allocation5], %s691_s11 }
  0x36   : > { %447 = vmatpush.msra.mxu2 %v705_v16  ;;  %483 = vmatpush.msra.mxu3 %v463_v22  ;;  %v780_v35 = vld [vmem:[%s352_s26] ss:$0 sm:$0xff]  ;;  %s559_s30 = sshll.u32 %s336_s12, 4  ;;  %s561_s18 = sshll.u32 %s557_s16, 4  ;;  %s560_s30 = int_to_ptr.vmem [resolvable:$true] %s559_s30  ;;  %s562_s18 = int_to_ptr.hbm [resolvable:$true] %s561_s18 }
  0x37   : > { %392 = vmatpush.msra.mxu0 %v696_v17  ;;  %711 = vmatmul.msk.f32.vlgmr.msra.gmra.mxu2 %vm373_vm0, %v704_v18  ;;  %v517_v59 = vld [vmem:[%s356_s20] sm:$0x3]  ;;  %s547_s26 = scalar_lea.sflag [#allocation4], %s1001_s15  ;;  %s829_s7 = sshra.s32 %s562_s18, 4  ;;  %s830_s7 = int_to_ptr.hbm [resolvable:$true] %s829_s7 }
  0x38   : > { %415 = vmatpush.msra.mxu1 %v358_v19  ;;  %702 = vmatmul.msk.f32.vlgmr.msra.gmra.mxu0 %vm373_vm0, %v695_v20  ;;  %s831_s25 = scalar_lea.hbm %s830_s7, 2  ;;  %s835_s20 = scalar_lea.hbm %s1105_s6, 4 }
  0x39   : > { %703 = vmatmul.msk.f32.vlgmr.msra.gmra.mxu1 %vm373_vm0, %v357_v21  ;;  %484 = vmatpush.msra.mxu3 %v462_v23  ;;  %p832_p6 = scmp.ne.s32.totalorder %s830_s7, %s831_s25  ;;  %p836_p4 = scmp.lt.s32.totalorder %s830_s7, %s1105_s6 }
  0x3a   : > { %p837_p5 = scmp.lt.s32.totalorder %s835_s20, %s831_s25 }
  0x3b   : > { %485 = vmatpush.msra.mxu3 %v461_v24  ;;  %p833_p2 = pnand %p832_p6, %p971_p11 }
  0x3c   : > { %p838_p7 = por %p837_p5, %p836_p4 }
  0x3d   : > { %486 = vmatpush.msra.mxu3 %v460_v25  ;;  %p834_p3 = pneg %p833_p2 }
  0x3f   : > { %487 = vmatpush.msra.mxu3 %v459_v26  ;;  %p839_p8 = pnand %p838_p7, %p834_p3 }
  0xb5   : > { %v394_v27 = vpop.f32.mrf.mxu0 }
  0xb6   : > { %v417_v28 = vpop.f32.mrf.mxu1 }
  0xb7   : > { %v418_v29 = vadd.f32 %v417_v28, %v394_v27 }
  0xba   : > { %v449_v31 = vpop.f32.mrf.mxu2 }
  0xbb   : > { %v452_v32 = vadd.f32 %v449_v31, %v418_v29 }
  0xbd   : > { %v457_v33 = vadd.f32 %v779_v30, %v452_v32 }
  0xbf   : > { %v458_v34 = vmax.f32 %v457_v33, 0.0 }
  0xc1   : > { %712 = vmatmul.msk.f32.vlgmr.msra.gmra.mxu3 %vm373_vm0, %v458_v34 }
 0x144   : > { %v489_v36 = vpop.f32.mrf.mxu3 }
 0x145   : > { %v490_v37 = vadd.f32 %v780_v35, %v489_v36 }
 0x147   : > { %v493_v38 = vsel %vm492_vm1, %v490_v37, -inf }
 0x148   : > { %494 = vmax.xlane.f32.xlu0 %v493_v38 }
 0x1bb   : > { %v495_v39 = vpop.xlane.xlu0 %494 }
 0x1bc   : > { %v496_v40 = vsub.f32 %v490_v37, %v495_v39 }
 0x1be   : > { %v497_v41 = vmul.f32 1.442695, %v496_v40 }
 0x1c0   : > { %781 = vpow2.f32 %v497_v41 }
 0x1c6   : > { %v782_v42 = vpop.eup %781 }
 0x1c7   : > { %v499_v43 = vsel %vm492_vm1, %v782_v42, 0.0 }
 0x1c8   : > { %500 = vadd.xlane.f32.xlu0 %v499_v43 }
 0x23b   : > { %v501_v47 = vpop.xlane.xlu0 %500 }
 0x23c   : > { %783 = vrcp.f32 %v501_v47  ;;  %v513_v51 = vand.u32 2147483648, %v501_v47  ;;  %v511_v53 = vand.u32 2147483647, %v501_v47  ;;  %vm507_vm3 = vweird.f32 %v501_v47 }
 0x23e   : > { %v514_v55 = vor.u32 1.1754944e-38, %v513_v51  ;;  %vm512_vm5 = vcmp.eq.f32.partialorder %v511_v53, 8.507059e+37 }
 0x242   : > { %v784_v48 = vpop.eup %783 }
 0x243   : > { %v503_v49 = vmul.f32 %v784_v48, %v501_v47  ;;  %vm508_vm2 = vweird.f32 %v784_v48 }
 0x244   : > { %vm509_vm4 = vmor %vm507_vm3, %vm508_vm2 }
 0x245   : > { %v504_v50 = vsub.f32 1.0, %v503_v49 }
 0x247   : > { %v505_v52 = vmul.f32 %v784_v48, %v504_v50 }
 0x249   : > { %v506_v54 = vadd.f32 %v784_v48, %v505_v52 }
 0x24b   : > { %v510_v56 = vsel %vm509_vm4, %v784_v48, %v506_v54 }
 0x24c   : > { %v515_v57 = vsel %vm512_vm5, %v514_v55, %v510_v56 }
 0x24d   : > { %v516_v58 = vmul.f32 %v782_v42, %v515_v57 }
 0x24f   : > { %520 = vperm.xlu2 %777, %v516_v58   ;;  %525 = vperm.xlu1 %775, %v516_v58  }
 0x257   : > { %776 = vset.pattern.permute.xlu1 %v887_v46 }
 0x258   : > { %535 = vperm.xlu1 %776, %v516_v58  }
 0x2a9   : > { %v521_v0 = vpop.permute.xlu2 %520 }
 0x2aa   : > { %v523_v2 = vmul.f32 %v521_v0, %v517_v59 }
 0x2c1   : > { %v526_v60 = vpop.permute.xlu1 %525 }
 0x2c2   : > { %v528_v61 = vmul.f32 %v526_v60, %v517_v59 }
 0x2c4   : > { %530 = vrot.lane.b32.xlu2 %v528_v61, %s888_s28 }
 0x2ca   : > { %v536_v62 = vpop.permute.xlu1 %535 }
 0x2cb   : > { %v538_v63 = vmul.f32 %v536_v62, %v517_v59 }
 0x2cd   : > { %540 = vrot.lane.b32.xlu0 %v538_v63, %s889_s29 }
 0x31e   : > { %v531_v1 = vpop.permute.xlu2 %530 }
 0x31f   : > { %v533_v3 = vadd.f32 %v531_v1, %v523_v2 }
 0x33f   : > { %v541_v4 = vpop.permute.xlu0 %540 }
 0x340   : > { %v543_v5 = vadd.f32 %v541_v4, %v533_v3 }
 0x342   : > { %545 = vst.msk [vmem:[%s336_s12] sm:$0x3] %vm544_vm6, %v543_v5 }
 0x343   : > { %842 = shalt.err (!%p839_p8)
}
 0x344   : > { %724 = dma.vmem_to_hbm [thread:$0]  (%p971_p11), %s560_s30, 32, %s562_s18, %s547_s26  }
 0x345 PF: > { %s573_s15 = sand.u32 1, %s869_s21   ;;  %p731_p10 = pnand %p688_p9, %p975_p12 }
 0x346   : > { %s574_s11 = scalar_lea.sflag [#allocation4], %s573_s15 }
 0x347   : > { %p732_p0 = pneg %p731_p10 }
 0x349   : > { %864 = dma.done.wait (%p732_p0), %s574_s11, 32  }
 0x34a   : > { %866 = vsyncadd (%p732_p0), %s574_s11, 4294967264  ;;  %s1111_s13 = sld [smem:[#allocation8_spill]]  ;;  %p19_p1 = scmp.ge.s32.totalorder %s950_s27, 4  }
 0x34b   : > { %s1112_s21 = smov %s873_s22  ;;  %s1113_s22 = smov %s877_s23 }
 0x34c   : > { %s1115_s24 = smov %s950_s27  ;;  %21 = sbr.rel (!%p19_p1) target bundleno = 5 (0x5), region = 108 }
 0x350   : > { %s1114_s23 = smov %s1111_s13 }
 0x351   :  { %580 = vsyncpa [#allocation3], 1 }
 0x352   :  { %582 = vsyncpa [#allocation3 + $0x1], 1 }
 0x353   :  { %583 = vsyncpa [#allocation4], 1 }
 0x354   :  { %585 = vsyncpa [#allocation4 + $0x1], 1 }

</bundles_post_ra>
